<compile_context>
chip_gen: v5e
topology: v5e:2x2
jax: 0.10.0
libtpu: 0.0.40
codegen_flags: <defaults>
</compile_context>

<pallas_src>
import functools

import jax
import jax.numpy as jnp
from jax.experimental import pallas as pl
from jax.experimental.pallas import tpu as pltpu


def _fd_kl_kernel(y_new_ref, y_old_ref, label_ref, o_ref, kl_acc, w_acc, *,
                  T, alpha, beta, B_true, out_scale):
    step = pl.program_id(0)

    @pl.when(step == 0)
    def _init():
        kl_acc[...] = jnp.zeros_like(kl_acc)
        w_acc[...] = jnp.zeros_like(w_acc)

    y_new = y_new_ref[...].astype(jnp.float32)        # (TB, C)
    y_old = y_old_ref[...].astype(jnp.float32)        # (TB, C)
    label = label_ref[...]                            # (TB, 1) int32
    tb, C = y_new.shape
    inv_T = 1.0 / T

    # ---- argmax(y_old, dim=1) with first-max tie-breaking (torch semantics) ----
    max_old = jnp.max(y_old, axis=1, keepdims=True)                    # (TB, 1)
    col_idx = jax.lax.broadcasted_iota(jnp.int32, (tb, C), 1)          # (TB, C)
    pred_old = jnp.min(jnp.where(y_old == max_old, col_idx, C),
                       axis=1, keepdims=True)                          # (TB, 1)
    weight_row = (pred_old == label).astype(jnp.float32) * beta + alpha

    # ---- shifted logits; reuse max_old for the y_old/T branch (T > 0) ----
    zn = y_new * inv_T
    zn = zn - jnp.max(zn, axis=1, keepdims=True)
    zo = (y_old - max_old) * inv_T
    exp_zn = jnp.exp(zn)
    exp_zo = jnp.exp(zo)

    if C >= 1024:
        # Row reductions on the idle MXU (frees the XLU cross-lane slot).
        ones = jnp.ones((C, 1), jnp.float32)
        rowsum = lambda x: jnp.dot(x, ones, preferred_element_type=jnp.float32)
    else:
        rowsum = lambda x: jnp.sum(x, axis=1, keepdims=True)

    s_n = rowsum(exp_zn)                       # (TB, 1)  sum exp(y_new/T - max)
    s_o = rowsum(exp_zo)                       # (TB, 1)  sum exp(y_old/T - max)
    d = rowsum(exp_zo * (zo - zn))             # (TB, 1)

    # Fused per-row KL: sum_c p_old * (logp_old - logp_new).
    # (After the fusion the only divide left is this per-row (TB,1) column, so
    #  an exact divide is kept instead of pl.reciprocal(approx=True).)
    kl_row = (jnp.log(s_n) - jnp.log(s_o)) + d / s_o                   # (TB, 1)

    if B_true % tb != 0:
        # Rows added by rounding B up to a multiple of TB contribute nothing.
        row = step * tb + jax.lax.broadcasted_iota(jnp.int32, (tb, 1), 0)
        valid = (row < B_true).astype(jnp.float32)
        kl_row = kl_row * valid
        weight_row = weight_row * valid

    kl_acc[...] += jnp.sum(kl_row, keepdims=True)
    w_acc[...] += jnp.sum(weight_row, keepdims=True)

    @pl.when(step == pl.num_programs(0) - 1)
    def _finish():
        o_ref[...] = kl_acc[...] * (T * T) * w_acc[...] * out_scale


def _choose_block_rows(B, C, in_itemsize):
    """Largest row block that keeps double-buffered inputs + f32 temporaries
    comfortably inside scoped VMEM (v7x only has 64 MiB physical)."""
    # per block row: 2 inputs x 2 pipeline buffers in native dtype + ~6 live
    # f32 (row, C) temporaries inside the kernel body
    per_row = C * (2 * 2 * in_itemsize + 6 * 4) + 32
    tb = (12 * 1024 * 1024) // per_row
    if tb >= B:
        return B                          # whole batch fits in one block
    tb = max(8, min(int(tb), 1024))       # >1024 rows gives no further HBM win
    return (tb // 8) * 8                  # sublane multiple for (8,128) tiling


def fd_kl(y_new, y_old, label, *, T=100.0, alpha=1.0, beta=5.0,
          size_average=True, block_rows=None):
    """Pallas implementation of FD_KL(T, alpha, beta, size_average)."""
    B, C = y_new.shape
    itemsize = max(jnp.dtype(y_new.dtype).itemsize,
                   jnp.dtype(y_old.dtype).itemsize)
    TB = block_rows if block_rows is not None else _choose_block_rows(B, C, itemsize)
    TB = min(int(TB), B)
    if TB < B:
        TB = max(8, (TB // 8) * 8)
    n_blocks = pl.cdiv(B, TB)
    B_pad = n_blocks * TB

    if B_pad != B:                         # pad batch; padded rows masked in-kernel
        pad = B_pad - B
        y_new = jnp.pad(y_new, ((0, pad), (0, 0)))
        y_old = jnp.pad(y_old, ((0, pad), (0, 0)))
        label = jnp.pad(label, ((0, pad),), constant_values=-1)
    label2d = label.astype(jnp.int32).reshape(B_pad, 1)

    kernel = functools.partial(
        _fd_kl_kernel, T=float(T), alpha=float(alpha), beta=float(beta),
        B_true=B, out_scale=(1.0 / B if size_average else 1.0))

    out = pl.pallas_call(
        kernel,
        out_shape=jax.ShapeDtypeStruct((1, 1), jnp.float32),
        grid_spec=pltpu.PrefetchScalarGridSpec(
            num_scalar_prefetch=0,
            grid=(n_blocks,),
            in_specs=[
                pl.BlockSpec((TB, C), lambda i: (i, 0)),   # y_new rows (native dtype)
                pl.BlockSpec((TB, C), lambda i: (i, 0)),   # y_old rows (native dtype)
                pl.BlockSpec((TB, 1), lambda i: (i, 0)),   # labels
            ],
            out_specs=pl.BlockSpec((1, 1), lambda i: (0, 0)),
            scratch_shapes=[pltpu.VMEM((1, 1), jnp.float32),   # running KL sum
                            pltpu.VMEM((1, 1), jnp.float32)],  # running weight sum
        ),
        compiler_params=pltpu.CompilerParams(
            dimension_semantics=("arbitrary",),     # batch axis carries accumulators
            vmem_limit_bytes=32 * 1024 * 1024,      # headroom on v7x's 64 MiB VMEM
        ),
    )(y_new, y_old, label2d)
    return out[0, 0]


def _fd_kl_reference(y_new, y_old, label, *, T=100.0, alpha=1.0, beta=5.0):
    """Pure-JAX reference mirroring the PyTorch module."""
    pred_old = jnp.argmax(y_old, axis=1)
    weight = (pred_old == label).astype(jnp.float32) * beta + alpha
    logp_new = jax.nn.log_softmax(y_new / T, axis=1)
    p_old = jax.nn.softmax(y_old / T, axis=1)
    logp_old = jax.nn.log_softmax(y_old / T, axis=1)
    kl = jnp.sum(p_old * (logp_old - logp_new))     # kl_div, size_average=False
    return jnp.mean(kl * T ** 2 * weight)           # size_average=True


if __name__ == "__main__":
    # --- test 1: module defaults (T=100), small shape, single block ---
    B, C = 8, 32
    k1, k2, k3 = jax.random.split(jax.random.PRNGKey(0), 3)
    y_new = jax.random.normal(k1, (B, C), dtype=jnp.float32)
    y_old = jax.random.normal(k2, (B, C), dtype=jnp.float32)
    label = jax.random.randint(k3, (B,), 0, C, dtype=jnp.int32)

    out = jax.block_until_ready(fd_kl(y_new, y_old, label))
    ref = _fd_kl_reference(y_new, y_old, label)
    # At T=100 the per-row KL (~1e-4) sits on top of ~3.5-magnitude log-sum-exp
    # terms, so the fused kernel and the log_softmax reference (different f32
    # paths) can differ at the ~1e-3 relative level once scaled by T^2.
    assert jnp.allclose(out, ref, rtol=1e-2, atol=1e-3), (out, ref)

    # --- test 2: exercise the gridded / accumulator / padding path
    #     (20 rows -> 3 blocks of 8 with 4 masked pad rows), non-default T ---
    B2, C2 = 20, 128
    k4, k5, k6 = jax.random.split(jax.random.PRNGKey(1), 3)
    y_new2 = jax.random.normal(k4, (B2, C2), dtype=jnp.float32)
    y_old2 = jax.random.normal(k5, (B2, C2), dtype=jnp.float32)
    label2 = jax.random.randint(k6, (B2,), 0, C2, dtype=jnp.int32)

    out2 = jax.block_until_ready(fd_kl(y_new2, y_old2, label2, T=2.0, block_rows=8))
    ref2 = _fd_kl_reference(y_new2, y_old2, label2, T=2.0)
    assert jnp.allclose(out2, ref2, rtol=1e-4, atol=1e-5), (out2, ref2)

    print("KERNEL_OK")
</pallas_src>

<mosaic_0001>
module attributes {stable_mosaic.version = 11 : i64} {
  func.func @_fd_kl_kernel(%arg0: i32, %arg1: memref<8x32xf32, #tpu.memory_space<vmem>>, %arg2: memref<8x32xf32, #tpu.memory_space<vmem>>, %arg3: memref<8x1xi32, #tpu.memory_space<vmem>>, %arg4: memref<1x1xf32, #tpu.memory_space<vmem>>, %arg5: memref<1x1xf32, #tpu.memory_space<vmem>>, %arg6: memref<1x1xf32, #tpu.memory_space<vmem>>) attributes {dimension_semantics = [#tpu.dimension_semantics<arbitrary>], iteration_bounds = array<i64: 1>, scalar_prefetch = 0 : i64, scratch_operands = 2 : i64, tpu.core_type = #tpu.core_type<tc>, window_params = [{transform_indices = @transform_0, window_bounds = array<i64: 8, 32>}, {transform_indices = @transform_1, window_bounds = array<i64: 8, 32>}, {transform_indices = @transform_2, window_bounds = array<i64: 8, 1>}, {pipeline_mode = #tpu.pipeline_mode<synchronous>, transform_indices = @transform_3, window_bounds = array<i64: 1, 1>}]} {
    %c0_i32 = arith.constant 0 : i32
    %0 = arith.cmpi eq, %arg0, %c0_i32 : i32
    %1 = arith.extui %0 : i1 to i32
    %c0_i32_0 = arith.constant 0 : i32
    %2 = arith.cmpi ne, %1, %c0_i32_0 : i32
    scf.if %2 {
      %cst_27 = arith.constant 0.000000e+00 : f32
      %66 = vector.broadcast %cst_27 : f32 to vector<1x1xf32>
      %c0_28 = arith.constant 0 : index
      %c0_29 = arith.constant 0 : index
      %67 = vector.load %arg5[%c0_28, %c0_29] : memref<1x1xf32, #tpu.memory_space<vmem>>, vector<1x1xf32>
      tpu.vector_store %arg5[%c0_28, %c0_29], %66 {strides = array<i32>} : memref<1x1xf32, #tpu.memory_space<vmem>>, vector<1x1xf32>,
      %cst_30 = arith.constant 0.000000e+00 : f32
      %68 = vector.broadcast %cst_30 : f32 to vector<1x1xf32>
      %c0_31 = arith.constant 0 : index
      %c0_32 = arith.constant 0 : index
      %69 = vector.load %arg6[%c0_31, %c0_32] : memref<1x1xf32, #tpu.memory_space<vmem>>, vector<1x1xf32>
      tpu.vector_store %arg6[%c0_31, %c0_32], %68 {strides = array<i32>} : memref<1x1xf32, #tpu.memory_space<vmem>>, vector<1x1xf32>,
    } else {
    }
    %c0 = arith.constant 0 : index
    %c0_1 = arith.constant 0 : index
    %3 = vector.load %arg1[%c0, %c0_1] : memref<8x32xf32, #tpu.memory_space<vmem>>, vector<8x32xf32>
    %c0_2 = arith.constant 0 : index
    %c0_3 = arith.constant 0 : index
    %4 = vector.load %arg2[%c0_2, %c0_3] : memref<8x32xf32, #tpu.memory_space<vmem>>, vector<8x32xf32>
    %c0_4 = arith.constant 0 : index
    %c0_5 = arith.constant 0 : index
    %5 = vector.load %arg3[%c0_4, %c0_5] : memref<8x1xi32, #tpu.memory_space<vmem>>, vector<8x1xi32>
    %cst = arith.constant dense<0xFF800000> : vector<8xf32>
    %6 = vector.multi_reduction <maximumf>, %4, %cst [1] : vector<8x32xf32> to vector<8xf32>
    %7 = vector.shape_cast %6 : vector<8xf32> to vector<8x1xf32>
    %8 = tpu.iota {dimensions = array<i32: 1>} : vector<8x32xi32>
    %9 = vector.broadcast %7 : vector<8x1xf32> to vector<8x32xf32>
    %10 = arith.cmpf oeq, %4, %9 : vector<8x32xf32>
    %c32_i32 = arith.constant 32 : i32
    %11 = vector.broadcast %c32_i32 : i32 to vector<8x32xi32>
    %12 = arith.select %10, %8, %11 : vector<8x32xi1>, vector<8x32xi32>
    %cst_6 = arith.constant dense<2147483647> : vector<8xi32>
    %13 = vector.multi_reduction <minsi>, %12, %cst_6 [1] : vector<8x32xi32> to vector<8xi32>
    %14 = vector.shape_cast %13 : vector<8xi32> to vector<8x1xi32>
    %15 = arith.cmpi eq, %14, %5 : vector<8x1xi32>
    %16 = arith.extui %15 : vector<8x1xi1> to vector<8x1xi32>
    %17 = arith.sitofp %16 : vector<8x1xi32> to vector<8x1xf32>
    %cst_7 = arith.constant 5.000000e+00 : f32
    %18 = vector.broadcast %cst_7 : f32 to vector<8x1xf32>
    %19 = arith.mulf %17, %18 : vector<8x1xf32>
    %cst_8 = arith.constant 1.000000e+00 : f32
    %20 = vector.broadcast %cst_8 : f32 to vector<8x1xf32>
    %21 = arith.addf %19, %20 : vector<8x1xf32>
    %cst_9 = arith.constant 0.00999999977 : f32
    %22 = vector.broadcast %cst_9 : f32 to vector<8x32xf32>
    %23 = arith.mulf %3, %22 : vector<8x32xf32>
    %cst_10 = arith.constant dense<0xFF800000> : vector<8xf32>
    %24 = vector.multi_reduction <maximumf>, %23, %cst_10 [1] : vector<8x32xf32> to vector<8xf32>
    %25 = vector.shape_cast %24 : vector<8xf32> to vector<8x1xf32>
    %26 = vector.broadcast %25 : vector<8x1xf32> to vector<8x32xf32>
    %27 = arith.subf %23, %26 : vector<8x32xf32>
    %28 = vector.broadcast %7 : vector<8x1xf32> to vector<8x32xf32>
    %29 = arith.subf %4, %28 : vector<8x32xf32>
    %cst_11 = arith.constant 0.00999999977 : f32
    %30 = vector.broadcast %cst_11 : f32 to vector<8x32xf32>
    %31 = arith.mulf %29, %30 : vector<8x32xf32>
    %32 = math.exp %27 : vector<8x32xf32>
    %33 = math.exp %31 : vector<8x32xf32>
    %cst_12 = arith.constant dense<0.000000e+00> : vector<8xf32>
    %34 = vector.multi_reduction <add>, %32, %cst_12 [1] : vector<8x32xf32> to vector<8xf32>
    %35 = vector.shape_cast %34 : vector<8xf32> to vector<8x1xf32>
    %cst_13 = arith.constant dense<0.000000e+00> : vector<8xf32>
    %36 = vector.multi_reduction <add>, %33, %cst_13 [1] : vector<8x32xf32> to vector<8xf32>
    %37 = vector.shape_cast %36 : vector<8xf32> to vector<8x1xf32>
    %38 = arith.subf %31, %27 : vector<8x32xf32>
    %39 = arith.mulf %33, %38 : vector<8x32xf32>
    %cst_14 = arith.constant dense<0.000000e+00> : vector<8xf32>
    %40 = vector.multi_reduction <add>, %39, %cst_14 [1] : vector<8x32xf32> to vector<8xf32>
    %41 = vector.shape_cast %40 : vector<8xf32> to vector<8x1xf32>
    %42 = math.log %35 : vector<8x1xf32>
    %43 = math.log %37 : vector<8x1xf32>
    %44 = arith.subf %42, %43 : vector<8x1xf32>
    %45 = arith.divf %41, %37 : vector<8x1xf32>
    %46 = arith.addf %44, %45 : vector<8x1xf32>
    %c0_15 = arith.constant 0 : index
    %c0_16 = arith.constant 0 : index
    %47 = vector.load %arg5[%c0_15, %c0_16] : memref<1x1xf32, #tpu.memory_space<vmem>>, vector<1x1xf32>
    %48 = vector.shape_cast %46 : vector<8x1xf32> to vector<1x8x1xf32>
    %cst_17 = arith.constant dense<0.000000e+00> : vector<1xf32>
    %49 = vector.multi_reduction <add>, %48, %cst_17 [1, 2] : vector<1x8x1xf32> to vector<1xf32>
    %50 = vector.shape_cast %49 : vector<1xf32> to vector<1x1x1xf32>
    %51 = vector.extract %50[0, 0, 0] : f32 from vector<1x1x1xf32>
    %52 = vector.broadcast %51 : f32 to vector<1x1xf32>
    %53 = arith.addf %47, %52 : vector<1x1xf32>
    %c0_18 = arith.constant 0 : index
    %c0_19 = arith.constant 0 : index
    %54 = vector.load %arg5[%c0_18, %c0_19] : memref<1x1xf32, #tpu.memory_space<vmem>>, vector<1x1xf32>
    tpu.vector_store %arg5[%c0_18, %c0_19], %53 {strides = array<i32>} : memref<1x1xf32, #tpu.memory_space<vmem>>, vector<1x1xf32>,
    %c0_20 = arith.constant 0 : index
    %c0_21 = arith.constant 0 : index
    %55 = vector.load %arg6[%c0_20, %c0_21] : memref<1x1xf32, #tpu.memory_space<vmem>>, vector<1x1xf32>
    %56 = vector.shape_cast %21 : vector<8x1xf32> to vector<1x8x1xf32>
    %cst_22 = arith.constant dense<0.000000e+00> : vector<1xf32>
    %57 = vector.multi_reduction <add>, %56, %cst_22 [1, 2] : vector<1x8x1xf32> to vector<1xf32>
    %58 = vector.shape_cast %57 : vector<1xf32> to vector<1x1x1xf32>
    %59 = vector.extract %58[0, 0, 0] : f32 from vector<1x1x1xf32>
    %60 = vector.broadcast %59 : f32 to vector<1x1xf32>
    %61 = arith.addf %55, %60 : vector<1x1xf32>
    %c0_23 = arith.constant 0 : index
    %c0_24 = arith.constant 0 : index
    %62 = vector.load %arg6[%c0_23, %c0_24] : memref<1x1xf32, #tpu.memory_space<vmem>>, vector<1x1xf32>
    tpu.vector_store %arg6[%c0_23, %c0_24], %61 {strides = array<i32>} : memref<1x1xf32, #tpu.memory_space<vmem>>, vector<1x1xf32>,
    %c0_i32_25 = arith.constant 0 : i32
    %63 = arith.cmpi eq, %arg0, %c0_i32_25 : i32
    %64 = arith.extui %63 : i1 to i32
    %c0_i32_26 = arith.constant 0 : i32
    %65 = arith.cmpi ne, %64, %c0_i32_26 : i32
    scf.if %65 {
      %c0_27 = arith.constant 0 : index
      %c0_28 = arith.constant 0 : index
      %66 = vector.load %arg5[%c0_27, %c0_28] : memref<1x1xf32, #tpu.memory_space<vmem>>, vector<1x1xf32>
      %cst_29 = arith.constant 1.000000e+04 : f32
      %67 = vector.broadcast %cst_29 : f32 to vector<1x1xf32>
      %68 = arith.mulf %66, %67 : vector<1x1xf32>
      %c0_30 = arith.constant 0 : index
      %c0_31 = arith.constant 0 : index
      %69 = vector.load %arg6[%c0_30, %c0_31] : memref<1x1xf32, #tpu.memory_space<vmem>>, vector<1x1xf32>
      %70 = arith.mulf %68, %69 : vector<1x1xf32>
      %cst_32 = arith.constant 1.250000e-01 : f32
      %71 = vector.broadcast %cst_32 : f32 to vector<1x1xf32>
      %72 = arith.mulf %70, %71 : vector<1x1xf32>
      %c0_33 = arith.constant 0 : index
      %c0_34 = arith.constant 0 : index
      %73 = vector.load %arg4[%c0_33, %c0_34] : memref<1x1xf32, #tpu.memory_space<vmem>>, vector<1x1xf32>
      tpu.vector_store %arg4[%c0_33, %c0_34], %72 {strides = array<i32>} : memref<1x1xf32, #tpu.memory_space<vmem>>, vector<1x1xf32>,
    } else {
    }
    return
  }
  func.func @transform_0(%arg0: i32) -> (i32, i32) {
    %c0_i32 = arith.constant 0 : i32
    %c0_i32_0 = arith.constant 0 : i32
    return %arg0, %c0_i32 : i32, i32
  }
  func.func @transform_1(%arg0: i32) -> (i32, i32) {
    %c0_i32 = arith.constant 0 : i32
    %c0_i32_0 = arith.constant 0 : i32
    return %arg0, %c0_i32 : i32, i32
  }
  func.func @transform_2(%arg0: i32) -> (i32, i32) {
    %c0_i32 = arith.constant 0 : i32
    %c0_i32_0 = arith.constant 0 : i32
    return %arg0, %c0_i32 : i32, i32
  }
  func.func @transform_3(%arg0: i32) -> (i32, i32) {
    %c0_i32 = arith.constant 0 : i32
    %c0_i32_0 = arith.constant 0 : i32
    %c0_i32_1 = arith.constant 0 : i32
    return %c0_i32, %c0_i32_0 : i32, i32
  }
}

</mosaic_0001>

<bundles_post_ra>
// kernel: tpu_custom_call.1
= control target key start
LH: loop header
LB: loop body
LE: loop exit
PB: predicated region body
PF: predicated region fallthrough
CT: control target
= control target key end

     0   :  { %8 = vsyncpa [#allocation5], 0  ;;  %s284_s0 = inlined_call_operand.vmem [shape: f32[8,32], index: 0, kind: input, shape index: {}]   ;;  %s285_s1 = inlined_call_operand.hbm [shape: f32[8,32], index: 1, kind: input, shape index: {}]   ;;  %s286_s2 = inlined_call_operand.vmem [shape: s32[8,1], index: 2, kind: input, shape index: {}]   ;;  %s287_s3 = inlined_call_operand.hbm [shape: f32[1,1], index: 3, kind: output, shape index: {}]  }
   0x1   :  { %9 = vsyncpa [#allocation6], 0  ;;  %s17_s14 = sshll.u32 %s285_s1, 4  ;;  %s236_s15 = smov [#allocation4]   ;;  %s18_s14 = int_to_ptr.hbm [resolvable:$true] %s17_s14 }
   0x2   :  { %s19_s16 = sshll.u32 %s236_s15, 4  ;;  %s20_s16 = int_to_ptr.vmem [resolvable:$true] %s19_s16 }
   0x3   :  { %22 = dma.hbm_to_vmem [thread:$0]  %s18_s14, 128, %s20_s16, [#allocation5]  }
   0x4   :  { %232 = dma.done.wait [#allocation5], 128  }
   0x5   :  { %233 = vsyncadd [#allocation5], 4294967168  ;;  %vm39_vm0 = vcmask 261120   ;;  %v37_v0 = vld [vmem:[#allocation4] sm:$0xff]  ;;  %v43_v5 = vlaneseq  ;;  %vm111_vm7 = vcmask 7168   ;;  %vm33_vm8 = vcmask 0  }
   0x6   :  { %v36_v1 = vld [vmem:[%s284_s0] sm:$0xff]  ;;  %v40_v2 = vsel %vm39_vm0, %v37_v0, -inf  ;;  %v237_v50 = vmov 0.0   ;;  %s238_s20 = smov [#allocation7]   ;;  %s156_s24 = sshll.u32 %s287_s3, 4  ;;  %s157_s24 = int_to_ptr.hbm [resolvable:$true] %s156_s24 }
   0x7   :  { %41 = vmax.xlane.f32.xlu0 %v40_v2  ;;  %v67_v3 = vmul.f32 0.01, %v36_v1  ;;  %v44_v6 = vand.u32 127, %v43_v5  ;;  %34 = vst.msk [vmem:[#allocation2] sm:$0x1] %vm33_vm8, %v237_v50  ;;  %v38_v55 = vld [vmem:[%s286_s2] sm:$0xff] }
   0x8   :  { %35 = vst.msk [vmem:[#allocation3] sm:$0x1] %vm33_vm8, %v237_v50  ;;  %s154_s21 = sshll.u32 %s238_s20, 4  ;;  %s155_s21 = int_to_ptr.vmem [resolvable:$true] %s154_s21 }
   0x9   :  { %v68_v4 = vsel %vm39_vm0, %v67_v3, -inf }
   0xf   :  { %69 = vmax.xlane.f32.xlu0 %v68_v4  ;;  %v110_v4 = vld [vmem:[#allocation2] sm:$0x1] }
  0x7a   :  { %v42_v7 = vpop.xlane.xlu0 %41 }
  0x7b   :  { %vm45_vm1 = vcmp.eq.f32.partialorder %v37_v0, %v42_v7  ;;  %v72_v8 = vsub.f32 %v37_v0, %v42_v7 }
  0x7c   :  { %v46_v9 = vsel %vm45_vm1, %v44_v6, 32 }
  0x7d   :  { %v73_v10 = vmul.f32 0.01, %v72_v8  ;;  %v47_v11 = vsel %vm39_vm0, %v46_v9, 2147483647 }
  0x7e   :  { %v49_v12 = vshra.s32 %v47_v11, 16  ;;  %v48_v25 = vand.u32 65535, %v47_v11 }
  0x7f   :  { %v76_v13 = vmul.f32 1.442695, %v73_v10 }
  0x80   :  { %v51_v14 = vcvt.s32.f32 %v49_v12  ;;  %v50_v27 = vcvt.s32.f32 %v48_v25 }
  0x81   :  { %174 = vpow2.f32 %v76_v13 }
  0x82   :  { %52 = vmin.xlane.f32.xlu1 %v51_v14  ;;  %v70_v15 = vpop.xlane.xlu0 %69 }
  0x83   :  { %v71_v16 = vsub.f32 %v67_v3, %v70_v15 }
  0x85   :  { %v74_v17 = vmul.f32 1.442695, %v71_v16  ;;  %v84_v18 = vsub.f32 %v73_v10, %v71_v16 }
  0x87   :  { %v175_v19 = vpop.eup %174  ;;  %176 = vpow2.f32 %v74_v17 }
  0x88   :  { %v81_v20 = vsel %vm39_vm0, %v175_v19, 0.0  ;;  %v85_v21 = vmul.f32 %v175_v19, %v84_v18 }
  0x8a   :  { %82 = vadd.xlane.f32.xlu1 %v81_v20  ;;  %v86_v22 = vsel %vm39_vm0, %v85_v21, 0.0 }
  0x8b   :  { %87 = vadd.xlane.f32.xlu0 %v86_v22 }
  0x8d   :  { %v177_v23 = vpop.eup %176 }
  0x8e   :  { %v78_v24 = vsel %vm39_vm0, %v177_v23, 0.0 }
  0x8f   :  { %79 = vadd.xlane.f32.xlu2 %v78_v24 }
  0xf5   :  { %v53_v26 = vpop.xlane.xlu1 %52 }
  0xf6   :  { %vm54_vm2 = vcmp.eq.f32.partialorder %v51_v14, %v53_v26  ;;  %v59_v51 = vcvt.f32.s32 %v53_v26  ;;  %v126_v14 = vld [vmem:[#allocation3] sm:$0x1] }
  0xf7   :  { %v55_v28 = vsel %vm54_vm2, %v50_v27, inf }
  0xf8   :  { %56 = vmin.xlane.f32.xlu2 %v55_v28  ;;  %v60_v53 = vshll.u32 %v59_v51, 16 }
  0xfd   :  { %v83_v29 = vpop.xlane.xlu1 %82 }
  0xfe   :  { %178 = vrcp.f32 %v83_v29  ;;  %v105_v34 = vand.u32 2147483648, %v83_v29  ;;  %v103_v37 = vand.u32 2147483647, %v83_v29  ;;  %vm99_vm4 = vweird.f32 %v83_v29  ;;  %v88_v45 = vpop.xlane.xlu0 %87 }
 0x100   :  { %v106_v41 = vor.u32 1.1754944e-38, %v105_v34  ;;  %vm104_vm6 = vcmp.eq.f32.partialorder %v103_v37, 8.507059e+37 }
 0x102   :  { %v80_v30 = vpop.xlane.xlu2 %79 }
 0x103   :  { %180 = vlog2.f32 %v80_v30 }
 0x104   :  { %v179_v31 = vpop.eup %178  ;;  %182 = vlog2.f32 %v83_v29 }
 0x105   :  { %v95_v32 = vmul.f32 %v179_v31, %v83_v29  ;;  %vm100_vm3 = vweird.f32 %v179_v31 }
 0x106   :  { %vm101_vm5 = vmor %vm99_vm4, %vm100_vm3 }
 0x107   :  { %v96_v33 = vsub.f32 1.0, %v95_v32 }
 0x109   :  { %v181_v35 = vpop.eup %180  ;;  %v97_v36 = vmul.f32 %v179_v31, %v96_v33 }
 0x10a   :  { %v183_v38 = vpop.eup %182  ;;  %v90_v40 = vmul.f32 0.6931472, %v181_v35 }
 0x10b   :  { %v98_v39 = vadd.f32 %v179_v31, %v97_v36  ;;  %v92_v43 = vmul.f32 0.6931472, %v183_v38 }
 0x10d   :  { %v102_v42 = vsel %vm101_vm5, %v179_v31, %v98_v39  ;;  %v93_v47 = vsub.f32 %v90_v40, %v92_v43 }
 0x10e   :  { %v107_v44 = vsel %vm104_vm6, %v106_v41, %v102_v42 }
 0x10f   :  { %v108_v46 = vmul.f32 %v107_v44, %v88_v45 }
 0x111   :  { %v109_v48 = vadd.f32 %v108_v46, %v93_v47 }
 0x113   :  { %v112_v49 = vsel %vm111_vm7, %v109_v48, 0.0 }
 0x114   :  { %113 = vadd.xlane.f32.xlu1 %v112_v49 }
 0x16b   :  { %v57_v52 = vpop.xlane.xlu2 %56 }
 0x16c   :  { %v58_v54 = vcvt.f32.s32 %v57_v52 }
 0x16e   :  { %v61_v56 = vadd.s32 %v60_v53, %v58_v54 }
 0x170   :  { %vm62_vm9 = vcmp.eq.s32.totalorder %v61_v56, %v38_v55 }
 0x171   :  { %v166_v57 = vsel %vm62_vm9, 1.0, %v237_v50 }
 0x172   :  { %v65_v58 = vmul.f32 5.0, %v166_v57 }
 0x174   :  { %v66_v59 = vadd.f32 1.0, %v65_v58 }
 0x176   :  { %v127_v60 = vsel %vm111_vm7, %v66_v59, 0.0 }
 0x177   :  { %128 = vadd.xlane.f32.xlu2 %v127_v60 }
 0x187   :  { %v114_v61 = vpop.xlane.xlu1 %113 }
 0x188   :  { %v115_v62 = vrot.slane %v114_v61, 4 }
 0x18a   :  { %v116_v63 = vadd.f32 %v115_v62, %v114_v61 }
 0x18c   :  { %v117_v0 = vrot.slane %v116_v63, 2 }
 0x18e   :  { %v118_v1 = vadd.f32 %v117_v0, %v116_v63 }
 0x190   :  { %v119_v2 = vrot.slane %v118_v1, 1 }
 0x192   :  { %v120_v3 = vadd.f32 %v119_v2, %v118_v1 }
 0x194   :  { %167 = vpush %v120_v3 }
 0x1c5   :  { %s168_s19 = spop %167 }
 0x1c6   :  { %v122_v5 = vstv %s168_s19 }
 0x1c7   :  { %v123_v6 = vadd.f32 %v122_v5, %v110_v4 }
 0x1c9   :  { %125 = vst.msk [vmem:[#allocation2] sm:$0x1] %vm33_vm8, %v123_v6 }
 0x1d0   :  { %v143_v17 = vld [vmem:[#allocation2] sm:$0x1] }
 0x1d1   :  { %v144_v18 = vmul.f32 10000.0, %v143_v17 }
 0x1ea   :  { %v129_v7 = vpop.xlane.xlu2 %128 }
 0x1eb   :  { %v130_v8 = vrot.slane %v129_v7, 4 }
 0x1ed   :  { %v131_v9 = vadd.f32 %v130_v8, %v129_v7 }
 0x1ef   :  { %v132_v10 = vrot.slane %v131_v9, 2 }
 0x1f1   :  { %v133_v11 = vadd.f32 %v132_v10, %v131_v9 }
 0x1f3   :  { %v134_v12 = vrot.slane %v133_v11, 1 }
 0x1f5   :  { %v135_v13 = vadd.f32 %v134_v12, %v133_v11 }
 0x1f7   :  { %169 = vpush %v135_v13 }
 0x228   :  { %s170_s2 = spop %169 }
 0x229   :  { %v137_v15 = vstv %s170_s2 }
 0x22a   :  { %v138_v16 = vadd.f32 %v137_v15, %v126_v14 }
 0x22c   :  { %139 = vst.msk [vmem:[#allocation3] sm:$0x1] %vm33_vm8, %v138_v16 }
 0x233   :  { %v145_v19 = vld [vmem:[#allocation3] sm:$0x1] }
 0x234   :  { %v146_v20 = vmul.f32 %v145_v19, %v144_v18 }
 0x236   :  { %v147_v21 = vmul.f32 0.125, %v146_v20 }
 0x238   :  { %148 = vst.msk [vmem:[#allocation7] sm:$0x1] %vm33_vm8, %v147_v21 }
 0x239   :  { %159 = dma.vmem_to_hbm [thread:$0]  %s155_s21, 16, %s157_s24, [#allocation6]  }
 0x23a   :  { %234 = dma.done.wait [#allocation6], 16  }
 0x23b   :  { %235 = vsyncadd [#allocation6], 4294967280 }
 0x23c   :  { %164 = vsyncpa [#allocation5], 1 }
 0x23d   :  { %165 = vsyncpa [#allocation6], 1 }

</bundles_post_ra>
